<compile_context>
chip_gen: v5e
topology: v5e:2x2
jax: 0.10.0
libtpu: 0.0.40
codegen_flags: <defaults>
</compile_context>

<pallas_src>
import functools

import numpy as np

import jax
import jax.numpy as jnp
from jax.experimental import pallas as pl
from jax.experimental.pallas import tpu as pltpu

MAX_VAL = 1e4  # kornia default: geodesic border pads with -max_val


def _cdiv(a, b):
    return -(-a // b)


def _round_up(a, b):
    return _cdiv(a, b) * b


def _num_tensorcores():
    """Best-effort TensorCore count (fallback 1 = no grid splitting)."""
    try:
        dev = jax.devices()[0]
        for attr in ("num_cores", "core_count"):
            v = getattr(dev, attr, None)
            if isinstance(v, int) and v > 0:
                return v
    except Exception:
        pass
    return 1


def _plan_blocks(s, h, w, itemsize, d):
    """Pick B (# slabs stacked per grid step; divisor of s) + VMEM budget."""
    lane = lambda c: _round_up(c, 128)

    def vmem_bytes(b):
        rows = _round_up(b * h, 8)
        blk = rows * lane(w) * itemsize                       # one in/out block
        hbuf = rows * lane(w + d - 1) * itemsize
        vbuf = _round_up(b * h + d - 1, 8) * lane(w) * itemsize
        return blk, 4 * blk + hbuf + vbuf                     # 2x in + 2x out + scratch

    divisors = [b for b in range(1, s + 1) if s % b == 0]
    fits = [b for b in divisors if vmem_bytes(b)[0] <= (4 << 20)]
    b = max(fits) if fits else 1
    # Split into >=2 grid steps only when >=2 TensorCores exist; on single-TC
    # v5e/v6e the grid is a serial loop and splitting just adds per-step cost.
    if _num_tensorcores() >= 2 and s // b < 2 and s >= 2:
        b = max(bb for bb in divisors if s // bb >= 2)
    return b, vmem_bytes(b)[1]


def _dilation_kernel(x_ref, o_ref, hbuf, vbuf, *, d, h):
    """Separable sliding-window max on a (1, B*H, W) block of stacked slabs.

    hbuf: (B*H, W + d - 1) column-halo scratch (horizontal pass).
    vbuf: (B*H + d - 1, W) row-halo scratch (vertical pass).
    Halo columns/rows hold -MAX_VAL (= the geodesic border); interior slab
    boundaries along the stacked row axis are excluded with per-shift masks.
    """
    pad_lo = (d - 1) // 2
    pad_hi = d - 1 - pad_lo
    x = x_ref[0]
    bh, w = x.shape
    neg = jnp.array(-MAX_VAL, x.dtype)

    # ---- horizontal pass: shifted lane reads from the column-halo scratch.
    if pad_lo > 0:
        hbuf[:, :pad_lo] = jnp.full((bh, pad_lo), -MAX_VAL, x.dtype)
    if pad_hi > 0:
        hbuf[:, pad_lo + w:] = jnp.full((bh, pad_hi), -MAX_VAL, x.dtype)
    hbuf[:, pad_lo:pad_lo + w] = x
    acc = x                                    # center tap (shift 0)
    for k in range(d):
        if k == pad_lo:
            continue
        acc = jnp.maximum(acc, hbuf[:, k:k + w])

    # ---- vertical pass: shifted sublane reads + per-slab row masks.
    if pad_lo > 0:
        vbuf[:pad_lo, :] = jnp.full((pad_lo, w), -MAX_VAL, x.dtype)
    if pad_hi > 0:
        vbuf[pad_lo + bh:, :] = jnp.full((pad_hi, w), -MAX_VAL, x.dtype)
    vbuf[pad_lo:pad_lo + bh, :] = acc
    row_in = jax.lax.broadcasted_iota(jnp.int32, (bh, w), 0) % h
    out = acc                                  # center tap (shift 0)
    for k in range(d):
        s = k - pad_lo
        if s == 0:
            continue
        shifted = vbuf[k:k + bh, :]
        valid = (row_in < h - s) if s > 0 else (row_in >= -s)
        out = jnp.maximum(out, jnp.where(valid, shifted, neg))

    o_ref[0] = out


@functools.partial(jax.jit, static_argnums=1)
def dilate(image, d):
    """Morphological dilation of NCHW `image` with an all-ones (d, d) kernel."""
    if d <= 1:
        return image
    n, c, h, w = image.shape
    s = n * c
    orig_dtype = image.dtype
    # kornia dilation is defined on float images; -MAX_VAL would wrap/clip in
    # integer dtypes, so compute in float32 there and cast back (exact for u8).
    compute_dtype = (orig_dtype if jnp.issubdtype(orig_dtype, jnp.floating)
                     else jnp.float32)
    itemsize = jnp.dtype(compute_dtype).itemsize

    b, vmem_needed = _plan_blocks(s, h, w, itemsize, d)
    m = s // b
    vmem_limit = int(min(max(vmem_needed + (4 << 20), 32 << 20), 128 << 20))
    # TODO(synk): frames so large that one (H, W) slab exceeds the v7x scoped
    # VMEM budget would need row-halo tiling of H; not needed at these shapes.

    # Metadata-only reshape for float inputs: no extra HBM pass.
    x = image.astype(compute_dtype).reshape(m, b * h, w)

    out = pl.pallas_call(
        functools.partial(_dilation_kernel, d=d, h=h),
        out_shape=jax.ShapeDtypeStruct((m, b * h, w), compute_dtype),
        grid=(m,),
        in_specs=[pl.BlockSpec((1, b * h, w), lambda i: (i, 0, 0))],
        out_specs=pl.BlockSpec((1, b * h, w), lambda i: (i, 0, 0)),
        scratch_shapes=[
            pltpu.VMEM((b * h, w + d - 1), compute_dtype),
            pltpu.VMEM((b * h + d - 1, w), compute_dtype),
        ],
        compiler_params=pltpu.CompilerParams(
            dimension_semantics=("parallel",),
            vmem_limit_bytes=vmem_limit),
    )(x)

    return out.reshape(n, c, h, w).astype(orig_dtype)


class RandomDilation:
    """JAX port of the PyTorch RandomDilation module (host-side RNG)."""

    def __init__(self, *, p: float, kernel_size_low: int, kernel_size_high: int,
                 seed: int = 0):
        self.p = p
        self.kernel_size_low = kernel_size_low
        self.kernel_size_high = kernel_size_high
        # All-ones kernels are fully defined by their size; no weights needed.
        self.kernel_sizes = list(range(kernel_size_low, kernel_size_high + 1, 2))
        # Host RNG mirrors torch.rand(1).item() / torch.randint(...) and avoids
        # a per-call device->host sync; the kernel size must be a static int.
        self._rng = np.random.default_rng(seed)

    def __call__(self, image):
        if self._rng.random() < self.p:
            idx = int(self._rng.integers(len(self.kernel_sizes)))
            return dilate(image, self.kernel_sizes[idx])
        return image


def _reference_dilation(image, d):
    """Pure-JAX reference: same-size max pool with -MAX_VAL geodesic padding."""
    pad_lo = (d - 1) // 2
    pad_hi = d - 1 - pad_lo
    x = jnp.pad(image.astype(jnp.float32),
                ((0, 0), (0, 0), (pad_lo, pad_hi), (pad_lo, pad_hi)),
                constant_values=-MAX_VAL)
    out = jax.lax.reduce_window(
        x, -jnp.inf, jax.lax.max,
        window_dimensions=(1, 1, d, d),
        window_strides=(1, 1, 1, 1),
        padding="VALID")
    return out.astype(image.dtype)


if __name__ == "__main__":
    key = jax.random.PRNGKey(0)
    k_img, _ = jax.random.split(key)

    # Small deterministic NCHW input.
    image = jax.random.uniform(k_img, (2, 4, 16, 16), dtype=jnp.float32)

    # Pallas dilation vs pure-JAX reference for every size the module can draw.
    for d in (3, 5):
        got = jax.block_until_ready(dilate(image, d))
        ref = _reference_dilation(image, d)
        assert got.shape == image.shape and got.dtype == image.dtype
        assert jnp.allclose(got, ref, atol=1e-6), f"mismatch vs reference, d={d}"

    # Odd channel count (exercises a different slab-stacking factor B).
    image3 = jax.random.uniform(k_img, (1, 3, 16, 16), dtype=jnp.float32)
    got3 = jax.block_until_ready(dilate(image3, 3))
    assert jnp.allclose(got3, _reference_dilation(image3, 3), atol=1e-6)

    # Integer dtype path (computed in f32 internally; exact for uint8 values).
    image_u8 = (image * 255.0).astype(jnp.uint8)
    got_u8 = jax.block_until_ready(dilate(image_u8, 3))
    assert got_u8.dtype == jnp.uint8
    assert jnp.array_equal(got_u8, _reference_dilation(image_u8, 3))

    # Module path (p=1.0 so the Pallas hot path definitely runs); replay the
    # host RNG to re-derive the kernel size the module chose.
    module = RandomDilation(p=1.0, kernel_size_low=3, kernel_size_high=5, seed=123)
    probe = np.random.default_rng(123)
    assert probe.random() < module.p
    d_expected = module.kernel_sizes[int(probe.integers(len(module.kernel_sizes)))]
    out = jax.block_until_ready(module(image))
    ref = _reference_dilation(image, d_expected)
    assert out.shape == image.shape and out.dtype == image.dtype
    assert jnp.allclose(out, ref, atol=1e-6), "mismatch vs reference dilation"

    print("KERNEL_OK")
</pallas_src>

<mosaic_0001>
module attributes {stable_mosaic.version = 11 : i64} {
  func.func @_dilation_kernel(%arg0: i32, %arg1: memref<1x128x16xf32, #tpu.memory_space<vmem>>, %arg2: memref<1x128x16xf32, #tpu.memory_space<vmem>>, %arg3: memref<128x18xf32, #tpu.memory_space<vmem>>, %arg4: memref<130x16xf32, #tpu.memory_space<vmem>>) attributes {dimension_semantics = [#tpu.dimension_semantics<parallel>], iteration_bounds = array<i64: 1>, scalar_prefetch = 0 : i64, scratch_operands = 2 : i64, tpu.core_type = #tpu.core_type<tc>, window_params = [{transform_indices = @transform_0, window_bounds = array<i64: 1, 128, 16>}, {transform_indices = @transform_1, window_bounds = array<i64: 1, 128, 16>}]} {
    %c0 = arith.constant 0 : index
    %c0_0 = arith.constant 0 : index
    %c0_1 = arith.constant 0 : index
    %0 = vector.load %arg1[%c0, %c0_0, %c0_1] : memref<1x128x16xf32, #tpu.memory_space<vmem>>, vector<1x128x16xf32>
    %1 = vector.shape_cast %0 : vector<1x128x16xf32> to vector<128x16xf32>
    %cst = arith.constant -1.000000e+04 : f32
    %2 = vector.broadcast %cst : f32 to vector<128x1xf32>
    %c0_2 = arith.constant 0 : index
    %c0_3 = arith.constant 0 : index
    %3 = vector.load %arg3[%c0_2, %c0_3] : memref<128x18xf32, #tpu.memory_space<vmem>>, vector<128x1xf32>
    tpu.vector_store %arg3[%c0_2, %c0_3], %2 {strides = array<i32>} : memref<128x18xf32, #tpu.memory_space<vmem>>, vector<128x1xf32>,
    %cst_4 = arith.constant -1.000000e+04 : f32
    %4 = vector.broadcast %cst_4 : f32 to vector<128x1xf32>
    %c0_5 = arith.constant 0 : index
    %c17 = arith.constant 17 : index
    %5 = vector.load %arg3[%c0_5, %c17] : memref<128x18xf32, #tpu.memory_space<vmem>>, vector<128x1xf32>
    tpu.vector_store %arg3[%c0_5, %c17], %4 {strides = array<i32>} : memref<128x18xf32, #tpu.memory_space<vmem>>, vector<128x1xf32>,
    %c0_6 = arith.constant 0 : index
    %c1 = arith.constant 1 : index
    %6 = vector.load %arg3[%c0_6, %c1] : memref<128x18xf32, #tpu.memory_space<vmem>>, vector<128x16xf32>
    tpu.vector_store %arg3[%c0_6, %c1], %1 {strides = array<i32>} : memref<128x18xf32, #tpu.memory_space<vmem>>, vector<128x16xf32>,
    %c0_7 = arith.constant 0 : index
    %c0_8 = arith.constant 0 : index
    %7 = vector.load %arg3[%c0_7, %c0_8] : memref<128x18xf32, #tpu.memory_space<vmem>>, vector<128x16xf32>
    %8 = arith.maximumf %1, %7 : vector<128x16xf32>
    %c0_9 = arith.constant 0 : index
    %c2 = arith.constant 2 : index
    %9 = vector.load %arg3[%c0_9, %c2] : memref<128x18xf32, #tpu.memory_space<vmem>>, vector<128x16xf32>
    %10 = arith.maximumf %8, %9 : vector<128x16xf32>
    %cst_10 = arith.constant -1.000000e+04 : f32
    %11 = vector.broadcast %cst_10 : f32 to vector<1x16xf32>
    %c0_11 = arith.constant 0 : index
    %c0_12 = arith.constant 0 : index
    %12 = vector.load %arg4[%c0_11, %c0_12] : memref<130x16xf32, #tpu.memory_space<vmem>>, vector<1x16xf32>
    tpu.vector_store %arg4[%c0_11, %c0_12], %11 {strides = array<i32>} : memref<130x16xf32, #tpu.memory_space<vmem>>, vector<1x16xf32>,
    %cst_13 = arith.constant -1.000000e+04 : f32
    %13 = vector.broadcast %cst_13 : f32 to vector<1x16xf32>
    %c129 = arith.constant 129 : index
    %c0_14 = arith.constant 0 : index
    %14 = vector.load %arg4[%c129, %c0_14] : memref<130x16xf32, #tpu.memory_space<vmem>>, vector<1x16xf32>
    tpu.vector_store %arg4[%c129, %c0_14], %13 {strides = array<i32>} : memref<130x16xf32, #tpu.memory_space<vmem>>, vector<1x16xf32>,
    %c1_15 = arith.constant 1 : index
    %c0_16 = arith.constant 0 : index
    %15 = vector.load %arg4[%c1_15, %c0_16] : memref<130x16xf32, #tpu.memory_space<vmem>>, vector<128x16xf32>
    tpu.vector_store %arg4[%c1_15, %c0_16], %10 {strides = array<i32>} : memref<130x16xf32, #tpu.memory_space<vmem>>, vector<128x16xf32>,
    %16 = tpu.iota {dimensions = array<i32: 0>} : vector<128x16xi32>
    %c16_i32 = arith.constant 16 : i32
    %c0_i32 = arith.constant 0 : i32
    %17 = arith.cmpi eq, %c16_i32, %c0_i32 : i32
    %c1_i32 = arith.constant 1 : i32
    %18 = arith.select %17, %c1_i32, %c16_i32 : i32
    %19 = vector.broadcast %18 : i32 to vector<128x16xi32>
    %20 = arith.remsi %16, %19 : vector<128x16xi32>
    %c0_i32_17 = arith.constant 0 : i32
    %21 = vector.broadcast %c0_i32_17 : i32 to vector<128x16xi32>
    %22 = arith.cmpi ne, %20, %21 : vector<128x16xi32>
    %c0_i32_18 = arith.constant 0 : i32
    %23 = vector.broadcast %c0_i32_18 : i32 to vector<128x16xi32>
    %24 = arith.cmpi slt, %20, %23 : vector<128x16xi32>
    %c0_i32_19 = arith.constant 0 : i32
    %25 = arith.cmpi slt, %18, %c0_i32_19 : i32
    %26 = vector.broadcast %25 : i1 to vector<128x16xi1>
    %27 = vector.broadcast %26 : vector<128x16xi1> to vector<128x16xi1>
    %28 = arith.xori %24, %27 : vector<128x16xi1>
    %29 = arith.andi %28, %22 : vector<128x16xi1>
    %30 = vector.broadcast %18 : i32 to vector<128x16xi32>
    %31 = arith.addi %20, %30 : vector<128x16xi32>
    %32 = arith.select %29, %31, %20 : vector<128x16xi1>, vector<128x16xi32>
    %c0_20 = arith.constant 0 : index
    %c0_21 = arith.constant 0 : index
    %33 = vector.load %arg4[%c0_20, %c0_21] : memref<130x16xf32, #tpu.memory_space<vmem>>, vector<128x16xf32>
    %c1_i32_22 = arith.constant 1 : i32
    %34 = vector.broadcast %c1_i32_22 : i32 to vector<128x16xi32>
    %35 = arith.cmpi sge, %32, %34 : vector<128x16xi32>
    %cst_23 = arith.constant -1.000000e+04 : f32
    %36 = vector.broadcast %cst_23 : f32 to vector<128x16xf32>
    %37 = arith.select %35, %33, %36 : vector<128x16xi1>, vector<128x16xf32>
    %38 = arith.maximumf %10, %37 : vector<128x16xf32>
    %c2_24 = arith.constant 2 : index
    %c0_25 = arith.constant 0 : index
    %39 = vector.load %arg4[%c2_24, %c0_25] : memref<130x16xf32, #tpu.memory_space<vmem>>, vector<128x16xf32>
    %c15_i32 = arith.constant 15 : i32
    %40 = vector.broadcast %c15_i32 : i32 to vector<128x16xi32>
    %41 = arith.cmpi slt, %32, %40 : vector<128x16xi32>
    %cst_26 = arith.constant -1.000000e+04 : f32
    %42 = vector.broadcast %cst_26 : f32 to vector<128x16xf32>
    %43 = arith.select %41, %39, %42 : vector<128x16xi1>, vector<128x16xf32>
    %44 = arith.maximumf %38, %43 : vector<128x16xf32>
    %c0_27 = arith.constant 0 : index
    %c0_28 = arith.constant 0 : index
    %c0_29 = arith.constant 0 : index
    %45 = vector.load %arg2[%c0_27, %c0_28, %c0_29] : memref<1x128x16xf32, #tpu.memory_space<vmem>>, vector<1x128x16xf32>
    %46 = vector.shape_cast %45 : vector<1x128x16xf32> to vector<128x16xf32>
    %47 = vector.shape_cast %44 : vector<128x16xf32> to vector<1x128x16xf32>
    tpu.vector_store %arg2[%c0_27, %c0_28, %c0_29], %47 {strides = array<i32>} : memref<1x128x16xf32, #tpu.memory_space<vmem>>, vector<1x128x16xf32>,
    return
  }
  func.func @transform_0(%arg0: i32) -> (i32, i32, i32) {
    %c0_i32 = arith.constant 0 : i32
    %c0_i32_0 = arith.constant 0 : i32
    %c0_i32_1 = arith.constant 0 : i32
    return %arg0, %c0_i32, %c0_i32_0 : i32, i32, i32
  }
  func.func @transform_1(%arg0: i32) -> (i32, i32, i32) {
    %c0_i32 = arith.constant 0 : i32
    %c0_i32_0 = arith.constant 0 : i32
    %c0_i32_1 = arith.constant 0 : i32
    return %arg0, %c0_i32, %c0_i32_0 : i32, i32, i32
  }
}

</mosaic_0001>

<bundles_post_ra>
// kernel: dilate.1
= control target key start
LH: loop header
LB: loop body
LE: loop exit
PB: predicated region body
PF: predicated region fallthrough
CT: control target
= control target key end

     0   :  { %6 = vsyncpa [#allocation5], 0  ;;  %s1136_s0 = inlined_call_operand.hbm [shape: f32[1,128,16], index: 0, kind: input, shape index: {}]   ;;  %s1137_s1 = inlined_call_operand.hbm [shape: f32[1,128,16], index: 1, kind: output, shape index: {}]  }
   0x1   :  { %7 = vsyncpa [#allocation6], 0  ;;  %s12_s8 = sshll.u32 %s1136_s0, 4  ;;  %s719_s9 = smov [#allocation4]   ;;  %s13_s8 = int_to_ptr.hbm [resolvable:$true] %s12_s8 }
   0x2   :  { %s14_s10 = sshll.u32 %s719_s9, 4  ;;  %s720_s11 = smov 128   ;;  %s15_s10 = int_to_ptr.vmem [resolvable:$true] %s14_s10 }
   0x3   :  { %s721_s12 = smov 8  }
   0x4   :  { %20 = dma.hbm_to_vmem [thread:$0]  %s13_s8, 2048, %s15_s10, [#allocation5], %s720_s11, %s720_s11, %s721_s12  }
   0x5   :  { %715 = dma.done.wait [#allocation5], 2048  }
   0x6   :  { %716 = vsyncadd [#allocation5], 4294965248  ;;  %v742_v0 = vld [vmem:[#allocation4 + $0x10] sm:$0xff]  ;;  %v744_v1 = vld [vmem:[#allocation4] sm:$0xff]  ;;  %s722_s13 = smov 1   ;;  %vm41_vm0 = vcmask 7168   ;;  %v288_v53 = vlaneseq }
   0x7   :  { %95 = vrot.lane.b32.xlu1 %v742_v0, %s722_s13  ;;  %91 = vrot.lane.b32.xlu0 %v744_v1, %s722_s13  ;;  %v750_v2 = vld [vmem:[#allocation4 + $0x20] sm:$0xff]  ;;  %v754_v3 = vld [vmem:[#allocation4 + $0x18] sm:$0xff]  ;;  %v756_v4 = vld [vmem:[#allocation4 + $0x8] sm:$0xff]  ;;  %v723_v6 = vmov -10000.0   ;;  %vm58_vm1 = vcmask 146568   ;;  %vm139_vm2 = vcmask 138248  }
   0x8   :  { %99 = vrot.lane.b32.xlu2 %v750_v2, %s722_s13  ;;  %v758_v5 = vld [vmem:[#allocation4 + $0x28] sm:$0xff]  ;;  %46 = vst.msk [vmem:[#allocation2 + $0x20] sm:$0xff] %vm41_vm0, %v723_v6  ;;  %v774_v7 = vld [vmem:[#allocation4 + $0x30] sm:$0xff]  ;;  %v776_v8 = vld [vmem:[#allocation4 + $0x38] sm:$0xff]  ;;  %s724_s0 = smov 126   ;;  %vm268_vm3 = vcmask 122880  }
   0x9   :  { %63 = vst.msk [vmem:[#allocation2 + $0x20] sm:$0xff] %vm58_vm1, %v723_v6  ;;  %v780_v9 = vld [vmem:[#allocation4 + $0x40] sm:$0xff]  ;;  %v802_v10 = vld [vmem:[#allocation4 + $0x48] sm:$0xff]  ;;  %v804_v11 = vld [vmem:[#allocation4 + $0x50] sm:$0xff]  ;;  %vm271_vm4 = vcmask 130048   ;;  %v947_v56 = vshrl.u32 %v288_v53, 7 }
   0xa   :  { %42 = vst.msk [vmem:[#allocation2] sm:$0xff] %vm41_vm0, %v723_v6  ;;  %v808_v12 = vld [vmem:[#allocation4 + $0x58] sm:$0xff]  ;;  %v830_v13 = vld [vmem:[#allocation4 + $0x60] sm:$0xff]  ;;  %v832_v14 = vld [vmem:[#allocation4 + $0x68] sm:$0xff]  ;;  %s725_s14 = smov [#allocation7]   ;;  %s647_s18 = sshll.u32 %s1137_s1, 4  ;;  %s648_s18 = int_to_ptr.hbm [resolvable:$true] %s647_s18 }
   0xb   :  { %43 = vst.msk [vmem:[#allocation2 + $0x8] sm:$0xff] %vm41_vm0, %v723_v6  ;;  %v836_v15 = vld [vmem:[#allocation4 + $0x70] sm:$0xff]  ;;  %v858_v16 = vld [vmem:[#allocation4 + $0x78] sm:$0xff]  ;;  %v290_v60 = vadd.s32 8, %v947_v56  ;;  %s645_s15 = sshll.u32 %s725_s14, 4  ;;  %s646_s15 = int_to_ptr.vmem [resolvable:$true] %s645_s15 }
   0xc   :  { %44 = vst.msk [vmem:[#allocation2 + $0x10] sm:$0xff] %vm41_vm0, %v723_v6 }
   0xd   :  { %45 = vst.msk [vmem:[#allocation2 + $0x18] sm:$0xff] %vm41_vm0, %v723_v6 }
   0xe   :  { %47 = vst.msk [vmem:[#allocation2 + $0x28] sm:$0xff] %vm41_vm0, %v723_v6 }
   0xf   :  { %97 = vrot.lane.b32.xlu1 %v754_v3, %s722_s13  ;;  %93 = vrot.lane.b32.xlu0 %v756_v4, %s722_s13  ;;  %48 = vst.msk [vmem:[#allocation2 + $0x30] sm:$0xff] %vm41_vm0, %v723_v6 }
  0x10   :  { %101 = vrot.lane.b32.xlu2 %v758_v5, %s722_s13  ;;  %49 = vst.msk [vmem:[#allocation2 + $0x38] sm:$0xff] %vm41_vm0, %v723_v6 }
  0x11   :  { %50 = vst.msk [vmem:[#allocation2 + $0x40] sm:$0xff] %vm41_vm0, %v723_v6 }
  0x12   :  { %51 = vst.msk [vmem:[#allocation2 + $0x48] sm:$0xff] %vm41_vm0, %v723_v6 }
  0x13   :  { %52 = vst.msk [vmem:[#allocation2 + $0x50] sm:$0xff] %vm41_vm0, %v723_v6 }
  0x14   :  { %53 = vst.msk [vmem:[#allocation2 + $0x58] sm:$0xff] %vm41_vm0, %v723_v6 }
  0x15   :  { %54 = vst.msk [vmem:[#allocation2 + $0x60] sm:$0xff] %vm41_vm0, %v723_v6 }
  0x16   :  { %55 = vst.msk [vmem:[#allocation2 + $0x68] sm:$0xff] %vm41_vm0, %v723_v6 }
  0x17   :  { %103 = vrot.lane.b32.xlu0 %v774_v7, %s722_s13  ;;  %105 = vrot.lane.b32.xlu1 %v776_v8, %s722_s13  ;;  %56 = vst.msk [vmem:[#allocation2 + $0x70] sm:$0xff] %vm41_vm0, %v723_v6 }
  0x18   :  { %107 = vrot.lane.b32.xlu2 %v780_v9, %s722_s13  ;;  %57 = vst.msk [vmem:[#allocation2 + $0x78] sm:$0xff] %vm41_vm0, %v723_v6 }
  0x19   :  { %61 = vst.msk [vmem:[#allocation2 + $0x10] sm:$0xff] %vm58_vm1, %v723_v6 }
  0x1a   :  { %59 = vst.msk [vmem:[#allocation2] sm:$0xff] %vm58_vm1, %v723_v6 }
  0x1b   :  { %60 = vst.msk [vmem:[#allocation2 + $0x8] sm:$0xff] %vm58_vm1, %v723_v6 }
  0x1c   :  { %62 = vst.msk [vmem:[#allocation2 + $0x18] sm:$0xff] %vm58_vm1, %v723_v6 }
  0x1d   :  { %64 = vst.msk [vmem:[#allocation2 + $0x28] sm:$0xff] %vm58_vm1, %v723_v6 }
  0x1e   :  { %65 = vst.msk [vmem:[#allocation2 + $0x30] sm:$0xff] %vm58_vm1, %v723_v6 }
  0x1f   :  { %109 = vrot.lane.b32.xlu0 %v802_v10, %s722_s13  ;;  %111 = vrot.lane.b32.xlu1 %v804_v11, %s722_s13  ;;  %66 = vst.msk [vmem:[#allocation2 + $0x38] sm:$0xff] %vm58_vm1, %v723_v6 }
  0x20   :  { %113 = vrot.lane.b32.xlu2 %v808_v12, %s722_s13  ;;  %67 = vst.msk [vmem:[#allocation2 + $0x40] sm:$0xff] %vm58_vm1, %v723_v6 }
  0x21   :  { %68 = vst.msk [vmem:[#allocation2 + $0x48] sm:$0xff] %vm58_vm1, %v723_v6 }
  0x22   :  { %69 = vst.msk [vmem:[#allocation2 + $0x50] sm:$0xff] %vm58_vm1, %v723_v6 }
  0x23   :  { %70 = vst.msk [vmem:[#allocation2 + $0x58] sm:$0xff] %vm58_vm1, %v723_v6 }
  0x24   :  { %71 = vst.msk [vmem:[#allocation2 + $0x60] sm:$0xff] %vm58_vm1, %v723_v6 }
  0x25   :  { %72 = vst.msk [vmem:[#allocation2 + $0x68] sm:$0xff] %vm58_vm1, %v723_v6 }
  0x26   :  { %73 = vst.msk [vmem:[#allocation2 + $0x70] sm:$0xff] %vm58_vm1, %v723_v6 }
  0x27   :  { %115 = vrot.lane.b32.xlu0 %v830_v13, %s722_s13  ;;  %117 = vrot.lane.b32.xlu1 %v832_v14, %s722_s13  ;;  %74 = vst.msk [vmem:[#allocation2 + $0x78] sm:$0xff] %vm58_vm1, %v723_v6 }
  0x28   :  { %119 = vrot.lane.b32.xlu2 %v836_v15, %s722_s13  ;;  %269 = vst.msk [vmem:[#allocation3] sm:$0x1] %vm268_vm3, %v723_v6 }
  0x29   :  { %270 = vst.msk [vmem:[#allocation3 + $0x81] sm:$0x1] %vm268_vm3, %v723_v6 }
  0x2f   :  { %121 = vrot.lane.b32.xlu0 %v858_v16, %s722_s13 }
  0x62   :  { %v100_v17 = vpop.permute.xlu2 %99 }
  0x63   :  { %144 = vst.msk [vmem:[#allocation2 + $0x20] sm:$0xff] %vm139_vm2, %v100_v17  ;;  %v316_v17 = vand.u32 15, %v290_v60  ;;  %v296_v60 = vadd.s32 56, %v947_v56 }
  0x65   :  { %vm967_vm5 = vcmp.lt.s32.totalorder %v316_v17, 15 }
  0x6a   :  { %v102_v18 = vpop.permute.xlu2 %101  ;;  %v160_v37 = vld [vmem:[#allocation2 + $0x20] sm:$0xff] }
  0x6b   :  { %145 = vst.msk [vmem:[#allocation2 + $0x28] sm:$0xff] %vm139_vm2, %v102_v18  ;;  %v176_v52 = vmax.f32 %v750_v2, %v160_v37 }
  0x72   :  { %v108_v19 = vpop.permute.xlu2 %107  ;;  %v887_v28 = vld [vmem:[#allocation2 + $0x28] sm:$0xff] }
  0x73   :  { %148 = vst.msk [vmem:[#allocation2 + $0x40] sm:$0xff] %vm139_vm2, %v108_v19  ;;  %v177_v18 = vmax.f32 %v758_v5, %v887_v28 }
  0x79   :  { %v96_v20 = vpop.permute.xlu1 %95  ;;  %v92_v21 = vpop.permute.xlu0 %91 }
  0x7a   :  { %142 = vst.msk [vmem:[#allocation2 + $0x10] sm:$0xff] %vm139_vm2, %v96_v20  ;;  %v114_v22 = vpop.permute.xlu2 %113  ;;  %v898_v33 = vld [vmem:[#allocation2 + $0x40] sm:$0xff]  ;;  %v358_v20 = vand.u32 15, %v296_v60  ;;  %v302_v60 = vadd.s32 104, %v947_v56 }
  0x7b   :  { %140 = vst.msk [vmem:[#allocation2] sm:$0xff] %vm139_vm2, %v92_v21  ;;  %v293_v21 = vadd.s32 32, %v947_v56 }
  0x7c   :  { %151 = vst.msk [vmem:[#allocation2 + $0x58] sm:$0xff] %vm139_vm2, %v114_v22  ;;  %vm1038_vm10 = vcmp.lt.s32.totalorder %v358_v20, 15 }
  0x81   :  { %v98_v23 = vpop.permute.xlu1 %97  ;;  %v94_v24 = vpop.permute.xlu0 %93  ;;  %v876_v25 = vld [vmem:[#allocation2 + $0x10] sm:$0xff] }
  0x82   :  { %143 = vst.msk [vmem:[#allocation2 + $0x18] sm:$0xff] %vm139_vm2, %v98_v23  ;;  %208 = vrot.lane.b32.xlu0 %v876_v25, %s724_s0  ;;  %v881_v26 = vld [vmem:[#allocation2] sm:$0xff]  ;;  %v120_v27 = vpop.permute.xlu2 %119  ;;  %v174_v57 = vmax.f32 %v742_v0, %v876_v25  ;;  %v291_v0 = vadd.s32 16, %v947_v56  ;;  %v292_v25 = vadd.s32 24, %v947_v56 }
  0x83   :  { %141 = vst.msk [vmem:[#allocation2 + $0x8] sm:$0xff] %vm139_vm2, %v94_v24  ;;  %204 = vrot.lane.b32.xlu1 %v881_v26, %s724_s0  ;;  %v909_v38 = vld [vmem:[#allocation2 + $0x58] sm:$0xff]  ;;  %v172_v58 = vmax.f32 %v744_v1, %v881_v26  ;;  %v309_v1 = vand.u32 15, %v947_v56 }
  0x84   :  { %154 = vst.msk [vmem:[#allocation2 + $0x70] sm:$0xff] %vm139_vm2, %v120_v27  ;;  %v323_v19 = vand.u32 15, %v291_v0 }
  0x85   :  { %vm973_vm6 = vcmp.ge.s32.totalorder %v309_v1, 1 }
  0x86   :  { %vm988_vm7 = vcmp.ge.s32.totalorder %v323_v19, 1 }
  0x89   :  { %v104_v29 = vpop.permute.xlu0 %103  ;;  %v889_v30 = vld [vmem:[#allocation2 + $0x18] sm:$0xff]  ;;  %v106_v31 = vpop.permute.xlu1 %105 }
  0x8a   :  { %146 = vst.msk [vmem:[#allocation2 + $0x30] sm:$0xff] %vm139_vm2, %v104_v29  ;;  %214 = vrot.lane.b32.xlu0 %v887_v28, %s724_s0  ;;  %v157_v32 = vld [vmem:[#allocation2 + $0x8] sm:$0xff] }
  0x8b   :  { %210 = vrot.lane.b32.xlu1 %v889_v30, %s724_s0  ;;  %206 = vrot.lane.b32.xlu2 %v157_v32, %s724_s0  ;;  %147 = vst.msk [vmem:[#allocation2 + $0x38] sm:$0xff] %vm139_vm2, %v106_v31  ;;  %v920_v43 = vld [vmem:[#allocation2 + $0x70] sm:$0xff]  ;;  %v173_v49 = vmax.f32 %v756_v4, %v157_v32 }
  0x91   :  { %v110_v34 = vpop.permute.xlu0 %109  ;;  %v900_v35 = vld [vmem:[#allocation2 + $0x30] sm:$0xff]  ;;  %v112_v36 = vpop.permute.xlu1 %111 }
  0x92   :  { %149 = vst.msk [vmem:[#allocation2 + $0x48] sm:$0xff] %vm139_vm2, %v110_v34  ;;  %220 = vrot.lane.b32.xlu0 %v898_v33, %s724_s0  ;;  %v163_v39 = vld [vmem:[#allocation2 + $0x38] sm:$0xff] }
  0x93   :  { %212 = vrot.lane.b32.xlu2 %v160_v37, %s724_s0  ;;  %216 = vrot.lane.b32.xlu1 %v900_v35, %s724_s0  ;;  %150 = vst.msk [vmem:[#allocation2 + $0x50] sm:$0xff] %vm139_vm2, %v112_v36  ;;  %v179_v59 = vmax.f32 %v776_v8, %v163_v39  ;;  %v175_v8 = vmax.f32 %v754_v3, %v889_v30 }
  0x99   :  { %v116_v40 = vpop.permute.xlu0 %115  ;;  %v911_v41 = vld [vmem:[#allocation2 + $0x48] sm:$0xff]  ;;  %v118_v42 = vpop.permute.xlu1 %117 }
  0x9a   :  { %152 = vst.msk [vmem:[#allocation2 + $0x60] sm:$0xff] %vm139_vm2, %v116_v40  ;;  %226 = vrot.lane.b32.xlu0 %v909_v38, %s724_s0  ;;  %v166_v44 = vld [vmem:[#allocation2 + $0x50] sm:$0xff] }
  0x9b   :  { %218 = vrot.lane.b32.xlu2 %v163_v39, %s724_s0  ;;  %222 = vrot.lane.b32.xlu1 %v911_v41, %s724_s0  ;;  %153 = vst.msk [vmem:[#allocation2 + $0x68] sm:$0xff] %vm139_vm2, %v118_v42  ;;  %v182_v22 = vmax.f32 %v804_v11, %v166_v44  ;;  %v337_v39 = vand.u32 15, %v293_v21  ;;  %v330_v42 = vand.u32 15, %v292_v25 }
  0x9d   :  { %vm1000_vm8 = vcmp.ge.s32.totalorder %v337_v39, 1  ;;  %vm1009_vm9 = vcmp.lt.s32.totalorder %v330_v42, 15 }
  0xa1   :  { %v122_v45 = vpop.permute.xlu0 %121  ;;  %v922_v46 = vld [vmem:[#allocation2 + $0x60] sm:$0xff] }
  0xa2   :  { %155 = vst.msk [vmem:[#allocation2 + $0x78] sm:$0xff] %vm139_vm2, %v122_v45  ;;  %232 = vrot.lane.b32.xlu0 %v920_v43, %s724_s0  ;;  %v930_v47 = vld [vmem:[#allocation2 + $0x68] sm:$0xff] }
  0xa3   :  { %224 = vrot.lane.b32.xlu2 %v166_v44, %s724_s0  ;;  %228 = vrot.lane.b32.xlu1 %v922_v46, %s724_s0  ;;  %v185_v53 = vmax.f32 %v832_v14, %v930_v47 }
  0xa9   :  { %v932_v48 = vld [vmem:[#allocation2 + $0x78] sm:$0xff] }
  0xab   :  { %230 = vrot.lane.b32.xlu2 %v930_v47, %s724_s0  ;;  %234 = vrot.lane.b32.xlu1 %v932_v48, %s724_s0 }
  0xe5   :  { %v207_v50 = vpop.permute.xlu2 %206 }
  0xe6   :  { %v253_v51 = vmax.f32 %v173_v49, %v207_v50 }
  0xe8   :  { %273 = vst.msk [vmem:[#allocation3 + $0x9] sm:$0xff] %vm271_vm4, %v253_v51 }
  0xed   :  { %v213_v54 = vpop.permute.xlu2 %212 }
  0xee   :  { %v943_v55 = vmax.f32 %v176_v52, %v213_v54  ;;  %v178_v54 = vmax.f32 %v774_v7, %v900_v35  ;;  %v295_v7 = vadd.s32 48, %v947_v56 }
  0xf0   :  { %276 = vst.msk [vmem:[#allocation3 + $0x21] sm:$0xff] %vm271_vm4, %v943_v55  ;;  %v351_v24 = vand.u32 15, %v295_v7 }
  0xf2   :  { %vm1045_vm11 = vcmp.ge.s32.totalorder %v351_v24, 1 }
  0xf4   :  { %v209_v61 = vpop.permute.xlu0 %208 }
  0xf5   :  { %v205_v62 = vpop.permute.xlu1 %204  ;;  %v219_v63 = vpop.permute.xlu2 %218  ;;  %v254_v2 = vmax.f32 %v174_v57, %v209_v61 }
  0xf6   :  { %v252_v4 = vmax.f32 %v172_v58, %v205_v62  ;;  %v955_v6 = vmax.f32 %v179_v59, %v219_v63 }
  0xf7   :  { %274 = vst.msk [vmem:[#allocation3 + $0x11] sm:$0xff] %vm271_vm4, %v254_v2 }
  0xf8   :  { %272 = vst.msk [vmem:[#allocation3 + $0x1] sm:$0xff] %vm271_vm4, %v252_v4 }
  0xf9   :  { %279 = vst.msk [vmem:[#allocation3 + $0x39] sm:$0xff] %vm271_vm4, %v955_v6 }
  0xfc   :  { %v215_v23 = vpop.permute.xlu0 %214 }
  0xfd   :  { %v211_v3 = vpop.permute.xlu1 %210  ;;  %v225_v26 = vpop.permute.xlu2 %224  ;;  %v978_v27 = vmax.f32 %v177_v18, %v215_v23 }
  0xfe   :  { %v562_v5 = vld [vmem:[#allocation3 + $0xa] sm:$0xff]  ;;  %v255_v28 = vmax.f32 %v175_v8, %v211_v3  ;;  %v980_v29 = vmax.f32 %v182_v22, %v225_v26  ;;  %v183_v3 = vmax.f32 %v808_v12, %v909_v38 }
  0xff   :  { %v497_v30 = vld [vmem:[#allocation3] sm:$0xff]  ;;  %v498_v31 = vld [vmem:[#allocation3 + $0x8] sm:$0xff]  ;;  %v594_v11 = vsel %vm967_vm5, %v562_v5, -10000.0  ;;  %277 = vst.msk [vmem:[#allocation3 + $0x29] sm:$0xff] %vm271_vm4, %v978_v27  ;;  %v499_v37 = vld [vmem:[#allocation3 + $0x10] sm:$0xff] }
 0x100   :  { %v529_v32 = vsel %vm973_vm6, %v497_v30, -10000.0  ;;  %v546_v34 = vmax.f32 %v253_v51, %v498_v31  ;;  %275 = vst.msk [vmem:[#allocation3 + $0x19] sm:$0xff] %vm271_vm4, %v255_v28  ;;  %v561_v44 = vld [vmem:[#allocation3 + $0x2] sm:$0xff]  ;;  %v531_v50 = vsel %vm988_vm7, %v499_v37, -10000.0  ;;  %v180_v51 = vmax.f32 %v780_v9, %v898_v33 }
 0x101   :  { %v545_v40 = vmax.f32 %v252_v4, %v529_v32  ;;  %282 = vst.msk [vmem:[#allocation3 + $0x51] sm:$0xff] %vm271_vm4, %v980_v29  ;;  %v294_v33 = vadd.s32 40, %v947_v56  ;;  %v547_v62 = vmax.f32 %v254_v2, %v531_v50  ;;  %v297_v2 = vadd.s32 64, %v947_v56 }
 0x102   :  { %v610_v45 = vmax.f32 %v546_v34, %v594_v11  ;;  %v299_v31 = vadd.s32 80, %v947_v56 }
 0x103   :  { %v609_v49 = vmax.f32 %v545_v40, %v561_v44  ;;  %v344_v23 = vand.u32 15, %v294_v33  ;;  %v365_v26 = vand.u32 15, %v297_v2  ;;  %v186_v33 = vmax.f32 %v836_v15, %v920_v43 }
 0x104   :  { %626 = vst.msk [vmem:[#allocation7 + $0x8] sm:$0xff] %vm271_vm4, %v610_v45  ;;  %v221_v57 = vpop.permute.xlu0 %220 }
 0x105   :  { %625 = vst.msk [vmem:[#allocation7] sm:$0xff] %vm271_vm4, %v609_v49  ;;  %v231_v9 = vpop.permute.xlu2 %230  ;;  %v217_v59 = vpop.permute.xlu1 %216  ;;  %v1015_v61 = vmax.f32 %v180_v51, %v221_v57  ;;  %vm1049_vm12 = vcmp.lt.s32.totalorder %v344_v23, 15  ;;  %vm1057_vm13 = vcmp.ge.s32.totalorder %v365_v26, 1  ;;  %v379_v51 = vand.u32 15, %v299_v31 }
 0x106   :  { %v1017_v14 = vmax.f32 %v185_v53, %v231_v9  ;;  %v258_v35 = vmax.f32 %v178_v54, %v217_v59  ;;  %v565_v22 = vld [vmem:[#allocation3 + $0x22] sm:$0xff]  ;;  %v304_v31 = vadd.s32 120, %v947_v56 }
 0x107   :  { %v500_v47 = vld [vmem:[#allocation3 + $0x18] sm:$0xff]  ;;  %v501_v63 = vld [vmem:[#allocation3 + $0x20] sm:$0xff]  ;;  %280 = vst.msk [vmem:[#allocation3 + $0x41] sm:$0xff] %vm271_vm4, %v1015_v61  ;;  %vm1078_vm14 = vcmp.ge.s32.totalorder %v379_v51, 1 }
 0x108   :  { %v563_v4 = vld [vmem:[#allocation3 + $0x12] sm:$0xff]  ;;  %v533_v0 = vsel %vm1000_vm8, %v501_v63, -10000.0  ;;  %v548_v17 = vmax.f32 %v255_v28, %v500_v47  ;;  %v564_v1 = vld [vmem:[#allocation3 + $0x1a] sm:$0xff]  ;;  %285 = vst.msk [vmem:[#allocation3 + $0x69] sm:$0xff] %vm271_vm4, %v1017_v14  ;;  %v502_v28 = vld [vmem:[#allocation3 + $0x28] sm:$0xff]  ;;  %v301_v47 = vadd.s32 96, %v947_v56 }
 0x109   :  { %v611_v8 = vmax.f32 %v547_v62, %v563_v4  ;;  %v549_v18 = vmax.f32 %v943_v55, %v533_v0  ;;  %v596_v19 = vsel %vm1009_vm9, %v564_v1, -10000.0  ;;  %278 = vst.msk [vmem:[#allocation3 + $0x31] sm:$0xff] %vm271_vm4, %v258_v35  ;;  %v181_v55 = vmax.f32 %v802_v10, %v911_v41 }
 0x10a   :  { %v612_v21 = vmax.f32 %v548_v17, %v596_v19  ;;  %v298_v41 = vadd.s32 72, %v947_v56  ;;  %v550_v37 = vmax.f32 %v978_v27, %v502_v28  ;;  %v303_v1 = vadd.s32 112, %v947_v56 }
 0x10b   :  { %627 = vst.msk [vmem:[#allocation7 + $0x10] sm:$0xff] %vm271_vm4, %v611_v8  ;;  %v613_v25 = vmax.f32 %v549_v18, %v565_v22  ;;  %v393_v23 = vand.u32 15, %v301_v47 }
 0x10c   :  { %628 = vst.msk [vmem:[#allocation7 + $0x18] sm:$0xff] %vm271_vm4, %v612_v21  ;;  %v227_v5 = vpop.permute.xlu0 %226  ;;  %v372_v54 = vand.u32 15, %v298_v41 }
 0x10d   :  { %629 = vst.msk [vmem:[#allocation7 + $0x20] sm:$0xff] %vm271_vm4, %v613_v25  ;;  %v223_v11 = vpop.permute.xlu1 %222  ;;  %v1043_v32 = vmax.f32 %v183_v3, %v227_v5  ;;  %vm1107_vm1 = vcmp.ge.s32.totalorder %v393_v23, 1 }
 0x10e   :  { %v568_v10 = vld [vmem:[#allocation3 + $0x3a] sm:$0xff]  ;;  %v261_v34 = vmax.f32 %v181_v55, %v223_v11  ;;  %vm1086_vm15 = vcmp.lt.s32.totalorder %v372_v54, 15  ;;  %v407_v55 = vand.u32 15, %v303_v1 }
 0x10f   :  { %v505_v36 = vld [vmem:[#allocation3 + $0x40] sm:$0xff]  ;;  %283 = vst.msk [vmem:[#allocation3 + $0x59] sm:$0xff] %vm271_vm4, %v1043_v32  ;;  %v600_v45 = vsel %vm1038_vm10, %v568_v10, -10000.0 }
 0x110   :  { %v503_v39 = vld [vmem:[#allocation3 + $0x30] sm:$0xff]  ;;  %v504_v40 = vld [vmem:[#allocation3 + $0x38] sm:$0xff]  ;;  %281 = vst.msk [vmem:[#allocation3 + $0x49] sm:$0xff] %vm271_vm4, %v261_v34  ;;  %v537_v58 = vsel %vm1057_vm13, %v505_v36, -10000.0  ;;  %vm527_vm3 = vcmp.ge.s32.totalorder %v407_v55, 1 }
 0x111   :  { %v566_v42 = vld [vmem:[#allocation3 + $0x2a] sm:$0xff]  ;;  %v535_v49 = vsel %vm1045_vm11, %v503_v39, -10000.0  ;;  %v552_v50 = vmax.f32 %v955_v6, %v504_v40  ;;  %v567_v57 = vld [vmem:[#allocation3 + $0x32] sm:$0xff]  ;;  %v184_v6 = vmax.f32 %v830_v13, %v922_v46  ;;  %v553_v63 = vmax.f32 %v1015_v61, %v537_v58 }
 0x112   :  { %v598_v27 = vsel %vm1049_vm12, %v566_v42, -10000.0  ;;  %v551_v52 = vmax.f32 %v258_v35, %v535_v49  ;;  %v300_v35 = vadd.s32 88, %v947_v56  ;;  %v400_v61 = vand.u32 15, %v302_v60 }
 0x113   :  { %v614_v53 = vmax.f32 %v550_v37, %v598_v27  ;;  %v616_v9 = vmax.f32 %v552_v50, %v600_v45  ;;  %v414_v42 = vand.u32 15, %v304_v31 }
 0x114   :  { %v615_v59 = vmax.f32 %v551_v52, %v567_v57  ;;  %v233_v62 = vpop.permute.xlu0 %232  ;;  %v386_v22 = vand.u32 15, %v300_v35  ;;  %vm1100_vm0 = vcmp.lt.s32.totalorder %v400_v61, 15 }
 0x115   :  { %630 = vst.msk [vmem:[#allocation7 + $0x28] sm:$0xff] %vm271_vm4, %v614_v53  ;;  %v229_v15 = vpop.permute.xlu1 %228  ;;  %v266_v43 = vmax.f32 %v186_v33, %v233_v62  ;;  %vm592_vm5 = vcmp.lt.s32.totalorder %v414_v42, 15 }
 0x116   :  { %632 = vst.msk [vmem:[#allocation7 + $0x38] sm:$0xff] %vm271_vm4, %v616_v9  ;;  %v264_v46 = vmax.f32 %v184_v6, %v229_v15  ;;  %v571_v25 = vld [vmem:[#allocation3 + $0x52] sm:$0xff]  ;;  %vm1111_vm2 = vcmp.lt.s32.totalorder %v386_v22, 15 }
 0x117   :  { %631 = vst.msk [vmem:[#allocation7 + $0x30] sm:$0xff] %vm271_vm4, %v615_v59  ;;  %v506_v4 = vld [vmem:[#allocation3 + $0x48] sm:$0xff]  ;;  %v507_v0 = vld [vmem:[#allocation3 + $0x50] sm:$0xff]  ;;  %v508_v26 = vld [vmem:[#allocation3 + $0x58] sm:$0xff] }
 0x118   :  { %v569_v17 = vld [vmem:[#allocation3 + $0x42] sm:$0xff]  ;;  %286 = vst.msk [vmem:[#allocation3 + $0x71] sm:$0xff] %vm271_vm4, %v266_v43  ;;  %v539_v8 = vsel %vm1078_vm14, %v507_v0, -10000.0  ;;  %v554_v2 = vmax.f32 %v261_v34, %v506_v4  ;;  %v570_v18 = vld [vmem:[#allocation3 + $0x4a] sm:$0xff]  ;;  %v556_v10 = vmax.f32 %v1043_v32, %v508_v26 }
 0x119   :  { %v617_v19 = vmax.f32 %v553_v63, %v569_v17  ;;  %284 = vst.msk [vmem:[#allocation3 + $0x61] sm:$0xff] %vm271_vm4, %v264_v46  ;;  %v555_v20 = vmax.f32 %v980_v29, %v539_v8  ;;  %v602_v21 = vsel %vm1086_vm15, %v570_v18, -10000.0  ;;  %v187_v29 = vmax.f32 %v858_v16, %v932_v48 }
 0x11a   :  { %v618_v24 = vmax.f32 %v554_v2, %v602_v21 }
 0x11b   :  { %633 = vst.msk [vmem:[#allocation7 + $0x40] sm:$0xff] %vm271_vm4, %v617_v19  ;;  %v619_v3 = vmax.f32 %v555_v20, %v571_v25 }
 0x11c   :  { %634 = vst.msk [vmem:[#allocation7 + $0x48] sm:$0xff] %vm271_vm4, %v618_v24 }
 0x11d   :  { %635 = vst.msk [vmem:[#allocation7 + $0x50] sm:$0xff] %vm271_vm4, %v619_v3  ;;  %v235_v11 = vpop.permute.xlu1 %234 }
 0x11e   :  { %v267_v38 = vmax.f32 %v187_v29, %v235_v11 }
 0x11f   :  { %v574_v12 = vld [vmem:[#allocation3 + $0x6a] sm:$0xff] }
 0x120   :  { %v509_v41 = vld [vmem:[#allocation3 + $0x60] sm:$0xff]  ;;  %v510_v34 = vld [vmem:[#allocation3 + $0x68] sm:$0xff]  ;;  %v606_v48 = vsel %vm1100_vm0, %v574_v12, -10000.0  ;;  %v511_v56 = vld [vmem:[#allocation3 + $0x70] sm:$0xff]  ;;  %287 = vst.msk [vmem:[#allocation3 + $0x79] sm:$0xff] %vm271_vm4, %v267_v38 }
 0x121   :  { %v572_v16 = vld [vmem:[#allocation3 + $0x5a] sm:$0xff]  ;;  %v541_v36 = vsel %vm1107_vm1, %v509_v41, -10000.0  ;;  %v558_v37 = vmax.f32 %v1017_v14, %v510_v34  ;;  %v573_v44 = vld [vmem:[#allocation3 + $0x62] sm:$0xff]  ;;  %v543_v50 = vsel %vm527_vm3, %v511_v56, -10000.0 }
 0x122   :  { %v604_v39 = vsel %vm1111_vm2, %v572_v16, -10000.0  ;;  %v557_v40 = vmax.f32 %v264_v46, %v541_v36  ;;  %v559_v14 = vmax.f32 %v266_v43, %v543_v50 }
 0x123   :  { %v620_v32 = vmax.f32 %v556_v10, %v604_v39  ;;  %v622_v45 = vmax.f32 %v558_v37, %v606_v48 }
 0x124   :  { %v621_v49 = vmax.f32 %v557_v40, %v573_v44 }
 0x125   :  { %636 = vst.msk [vmem:[#allocation7 + $0x58] sm:$0xff] %vm271_vm4, %v620_v32 }
 0x126   :  { %638 = vst.msk [vmem:[#allocation7 + $0x68] sm:$0xff] %vm271_vm4, %v622_v45 }
 0x127   :  { %637 = vst.msk [vmem:[#allocation7 + $0x60] sm:$0xff] %vm271_vm4, %v621_v49  ;;  %v512_v27 = vld [vmem:[#allocation3 + $0x78] sm:$0xff] }
 0x128   :  { %v575_v51 = vld [vmem:[#allocation3 + $0x72] sm:$0xff]  ;;  %v576_v52 = vld [vmem:[#allocation3 + $0x7a] sm:$0xff]  ;;  %v560_v53 = vmax.f32 %v267_v38, %v512_v27 }
 0x129   :  { %v608_v54 = vsel %vm592_vm5, %v576_v52, -10000.0  ;;  %v623_v57 = vmax.f32 %v559_v14, %v575_v51 }
 0x12a   :  { %v624_v58 = vmax.f32 %v560_v53, %v608_v54 }
 0x12b   :  { %639 = vst.msk [vmem:[#allocation7 + $0x70] sm:$0xff] %vm271_vm4, %v623_v57 }
 0x12c   :  { %640 = vst.msk [vmem:[#allocation7 + $0x78] sm:$0xff] %vm271_vm4, %v624_v58 }
 0x12d   :  { %653 = dma.vmem_to_hbm [thread:$0]  %s646_s15, 2048, %s648_s18, [#allocation6], %s720_s11, %s720_s11, %s721_s12  }
 0x12e   :  { %717 = dma.done.wait [#allocation6], 2048  }
 0x12f   :  { %718 = vsyncadd [#allocation6], 4294965248 }
 0x130   :  { %658 = vsyncpa [#allocation5], 1 }
 0x131   :  { %659 = vsyncpa [#allocation6], 1 }

</bundles_post_ra>
